<compile_context>
chip_gen: v6e
topology: v6e:2x2x1
jax: 0.10.0
libtpu: 0.0.40
codegen_flags: <defaults>
</compile_context>

<pallas_src>
import math

import jax
import jax.numpy as jnp
from jax import lax
from jax.experimental import pallas as pl
from jax.experimental.pallas import tpu as pltpu


def _qkv_attn_kernel(q_ref, k_ref, v_ref, out_ref):
    # q_ref: (Hb, C, tq); k_ref, v_ref: (Hb, C, T); out_ref: (Hb, C, tq)
    ch = q_ref.shape[1]

    q = q_ref[...]
    k = k_ref[...]
    v = v_ref[...]

    # Single combined scale (== scale*scale of the legacy double-scale trick),
    # applied only to q, in the native dtype.
    qs = q * (1.0 / math.sqrt(ch))

    # scores[h, t, s] = sum_c qs[h, c, t] * k[h, c, s]
    # dot_general with explicit contraction dims -> MXU, no transpose ops.
    scores = lax.dot_general(
        qs, k,
        dimension_numbers=(((1,), (1,)), ((0,), (0,))),
        preferred_element_type=jnp.float32,
    )                                                   # (Hb, tq, T) f32

    # Numerically stable softmax statistics in f32; normalization is deferred
    # until after the second matmul.
    m = jnp.max(scores, axis=-1, keepdims=True)         # (Hb, tq, 1)
    e = jnp.exp(scores - m)                             # (Hb, tq, T) f32
    l = jnp.sum(e, axis=-1)                             # (Hb, tq)

    # Cast the (unnormalized) weights back to the input dtype — matches the
    # reference's `.type(weight.dtype)` and keeps the MXU operands narrow.
    w = e.astype(v.dtype)

    # a[h, c, t] = sum_s v[h, c, s] * w[h, t, s]  (contract last dim of both,
    # no explicit transpose of the T x T weights).
    a = lax.dot_general(
        v, w,
        dimension_numbers=(((2,), (2,)), ((0,), (0,))),
        preferred_element_type=jnp.float32,
    )                                                   # (Hb, C, tq) f32

    # Deferred normalization: C*tq multiplies + EUP reciprocal (free-ish slot).
    inv_l = pl.reciprocal(l, approx=True)               # (Hb, tq)
    out_ref[...] = (a * inv_l[:, None, :]).astype(out_ref.dtype)


def _pick_tiles(b: int, ch: int, t: int):
    """Choose (head-batch, query-tile) sizes."""
    # Query tile: full T when small, else the largest lane-aligned divisor so
    # only a (tq, T) score slab is live at a time.
    if t <= 512:
        tq = t
    else:
        tq = t
        for cand in (512, 256, 128):
            if t % cand == 0:
                tq = cand
                break
    # Head batching: amortize per-grid-step overhead when per-head work is
    # tiny.  Keep the per-step f32 score slab and the K/V blocks modest.
    hb = 1
    for cand in (8, 4, 2):
        if (b % cand == 0
                and cand * tq * t * 4 <= (2 << 20)
                and cand * 3 * ch * t * 4 <= (2 << 20)):
            hb = cand
            break
    return hb, tq


def _vmem_budget_bytes(hb: int, ch: int, t: int, tq: int, itemsize: int) -> int:
    # Double-buffered pipeline inputs/outputs.
    io = 2 * hb * itemsize * (ch * tq + 2 * ch * t + ch * tq)
    # Live intermediates: scores + exp (f32), low-precision weights, f32 acc.
    inter = hb * (2 * tq * t * 4 + tq * t * itemsize + 2 * ch * tq * 4)
    budget = io + inter + (8 << 20)                     # headroom
    return int(min(max(budget, 16 << 20), 64 << 20))    # stay under v7x VMEM


def qkv_attention_legacy(qkv: jax.Array, n_heads: int) -> jax.Array:
    """qkv: [N, H*3*C, T] -> [N, H*C, T]"""
    bs, width, length = qkv.shape
    assert width % (3 * n_heads) == 0
    ch = width // (3 * n_heads)
    b = bs * n_heads
    t = length

    hb, tq = _pick_tiles(b, ch, t)
    itemsize = jnp.dtype(qkv.dtype).itemsize

    # [b, 3, C, T]: axis 1 selects q / k / v (matches torch's split(ch, dim=1)).
    qkv_r = qkv.reshape(b, 3, ch, t)

    grid = (b // hb, t // tq)

    # Same HBM buffer, three separately-specced views (Squeezed q/k/v axis).
    q_spec = pl.BlockSpec((hb, pl.Squeezed(), ch, tq), lambda i, j: (i, 0, 0, j))
    k_spec = pl.BlockSpec((hb, pl.Squeezed(), ch, t),  lambda i, j: (i, 1, 0, 0))
    v_spec = pl.BlockSpec((hb, pl.Squeezed(), ch, t),  lambda i, j: (i, 2, 0, 0))
    out_spec = pl.BlockSpec((hb, ch, tq), lambda i, j: (i, 0, j))

    out = pl.pallas_call(
        _qkv_attn_kernel,
        out_shape=jax.ShapeDtypeStruct((b, ch, t), qkv.dtype),
        grid_spec=pltpu.PrefetchScalarGridSpec(
            num_scalar_prefetch=0,
            grid=grid,
            in_specs=[q_spec, k_spec, v_spec],
            out_specs=out_spec,
        ),
        compiler_params=pltpu.CompilerParams(
            dimension_semantics=("parallel", "parallel"),
            vmem_limit_bytes=_vmem_budget_bytes(hb, ch, t, tq, itemsize),
        ),
    )(qkv_r, qkv_r, qkv_r)

    return out.reshape(bs, n_heads * ch, length)


def _reference(qkv: jax.Array, n_heads: int) -> jax.Array:
    bs, width, length = qkv.shape
    ch = width // (3 * n_heads)
    x = qkv.reshape(bs * n_heads, 3 * ch, length)
    q, k, v = x[:, :ch], x[:, ch:2 * ch], x[:, 2 * ch:]
    scale = 1.0 / math.sqrt(math.sqrt(ch))
    w = jnp.einsum('bct,bcs->bts', q * scale, k * scale)
    w = jax.nn.softmax(w.astype(jnp.float32), axis=-1).astype(qkv.dtype)
    a = jnp.einsum('bts,bcs->bct', w, v)
    return a.reshape(bs, -1, length)


if __name__ == "__main__":
    n_heads = 2
    N, C, T = 2, 8, 16                # qkv: [N, H*3*C, T] = [2, 48, 16]
    key = jax.random.PRNGKey(0)
    qkv = jax.random.normal(key, (N, n_heads * 3 * C, T), dtype=jnp.float32)

    out = qkv_attention_legacy(qkv, n_heads)
    out = jax.block_until_ready(out)

    ref = _reference(qkv, n_heads)
    assert out.shape == (N, n_heads * C, T)
    max_err = float(jnp.max(jnp.abs(out - ref)))
    # Tolerance accounts for the approx EUP reciprocal used for the deferred
    # softmax normalization.
    assert jnp.allclose(out, ref, atol=5e-3, rtol=5e-3), f"max abs err {max_err}"
    print("KERNEL_OK")
</pallas_src>

<mosaic_0001>
module attributes {stable_mosaic.version = 11 : i64} {
  func.func @_qkv_attn_kernel(%arg0: i32, %arg1: i32, %arg2: memref<4x1x8x16xf32, #tpu.memory_space<vmem>>, %arg3: memref<4x1x8x16xf32, #tpu.memory_space<vmem>>, %arg4: memref<4x1x8x16xf32, #tpu.memory_space<vmem>>, %arg5: memref<4x8x16xf32, #tpu.memory_space<vmem>>) attributes {dimension_semantics = [#tpu.dimension_semantics<parallel>, #tpu.dimension_semantics<parallel>], iteration_bounds = array<i64: 1, 1>, scalar_prefetch = 0 : i64, scratch_operands = 0 : i64, tpu.core_type = #tpu.core_type<tc>, window_params = [{transform_indices = @transform_0, window_bounds = array<i64: 4, 1, 8, 16>}, {transform_indices = @transform_1, window_bounds = array<i64: 4, 1, 8, 16>}, {transform_indices = @transform_2, window_bounds = array<i64: 4, 1, 8, 16>}, {transform_indices = @transform_3, window_bounds = array<i64: 4, 8, 16>}]} {
    %c0 = arith.constant 0 : index
    %c0_0 = arith.constant 0 : index
    %c0_1 = arith.constant 0 : index
    %c0_2 = arith.constant 0 : index
    %0 = vector.load %arg2[%c0, %c0_0, %c0_1, %c0_2] : memref<4x1x8x16xf32, #tpu.memory_space<vmem>>, vector<4x1x8x16xf32>
    %1 = vector.shape_cast %0 : vector<4x1x8x16xf32> to vector<4x8x16xf32>
    %c0_3 = arith.constant 0 : index
    %c0_4 = arith.constant 0 : index
    %c0_5 = arith.constant 0 : index
    %c0_6 = arith.constant 0 : index
    %2 = vector.load %arg3[%c0_3, %c0_4, %c0_5, %c0_6] : memref<4x1x8x16xf32, #tpu.memory_space<vmem>>, vector<4x1x8x16xf32>
    %3 = vector.shape_cast %2 : vector<4x1x8x16xf32> to vector<4x8x16xf32>
    %c0_7 = arith.constant 0 : index
    %c0_8 = arith.constant 0 : index
    %c0_9 = arith.constant 0 : index
    %c0_10 = arith.constant 0 : index
    %4 = vector.load %arg4[%c0_7, %c0_8, %c0_9, %c0_10] : memref<4x1x8x16xf32, #tpu.memory_space<vmem>>, vector<4x1x8x16xf32>
    %5 = vector.shape_cast %4 : vector<4x1x8x16xf32> to vector<4x8x16xf32>
    %cst = arith.constant 0.353553385 : f32
    %6 = vector.broadcast %cst : f32 to vector<4x8x16xf32>
    %7 = arith.mulf %1, %6 : vector<4x8x16xf32>
    %cst_11 = arith.constant dense<0.000000e+00> : vector<4x16x16xf32>
    %8 = tpu.matmul %7, %3, %cst_11 {dimension_numbers = #tpu.dot_dimension_numbers<[1], [1], [2], [2], [0, 0, 0, 2, 1, 2], [0], [0]>} : vector<4x8x16xf32>, vector<4x8x16xf32>, vector<4x16x16xf32> -> vector<4x16x16xf32>
    %cst_12 = arith.constant dense<0xFF800000> : vector<4x16xf32>
    %9 = vector.multi_reduction <maximumf>, %8, %cst_12 [2] : vector<4x16x16xf32> to vector<4x16xf32>
    %10 = vector.shape_cast %9 : vector<4x16xf32> to vector<4x16x1xf32>
    %11 = vector.broadcast %10 : vector<4x16x1xf32> to vector<4x16x16xf32>
    %12 = arith.subf %8, %11 : vector<4x16x16xf32>
    %13 = math.exp %12 : vector<4x16x16xf32>
    %cst_13 = arith.constant dense<0.000000e+00> : vector<4x16xf32>
    %14 = vector.multi_reduction <add>, %13, %cst_13 [2] : vector<4x16x16xf32> to vector<4x16xf32>
    %cst_14 = arith.constant dense<0.000000e+00> : vector<4x8x16xf32>
    %15 = tpu.matmul %5, %13, %cst_14 {dimension_numbers = #tpu.dot_dimension_numbers<[2], [2], [1], [1], [0, 0, 0, 1, 1, 1], [0], [0]>} : vector<4x8x16xf32>, vector<4x16x16xf32>, vector<4x8x16xf32> -> vector<4x8x16xf32>
    %16 = tpu.reciprocal %14 {approx = true} : vector<4x16xf32> -> vector<4x16xf32>
    %17 = vector.shape_cast %16 : vector<4x16xf32> to vector<4x1x16xf32>
    %18 = vector.broadcast %17 : vector<4x1x16xf32> to vector<4x8x16xf32>
    %19 = arith.mulf %15, %18 : vector<4x8x16xf32>
    %c0_15 = arith.constant 0 : index
    %c0_16 = arith.constant 0 : index
    %c0_17 = arith.constant 0 : index
    %20 = vector.load %arg5[%c0_15, %c0_16, %c0_17] : memref<4x8x16xf32, #tpu.memory_space<vmem>>, vector<4x8x16xf32>
    tpu.vector_store %arg5[%c0_15, %c0_16, %c0_17], %19 {strides = array<i32>} : memref<4x8x16xf32, #tpu.memory_space<vmem>>, vector<4x8x16xf32>,
    return
  }
  func.func @transform_0(%arg0: i32, %arg1: i32) -> (i32, i32, i32, i32) {
    %c0_i32 = arith.constant 0 : i32
    %c0_i32_0 = arith.constant 0 : i32
    %c0_i32_1 = arith.constant 0 : i32
    return %arg0, %c0_i32, %c0_i32_0, %arg1 : i32, i32, i32, i32
  }
  func.func @transform_1(%arg0: i32, %arg1: i32) -> (i32, i32, i32, i32) {
    %c1_i32 = arith.constant 1 : i32
    %c0_i32 = arith.constant 0 : i32
    %c0_i32_0 = arith.constant 0 : i32
    %c0_i32_1 = arith.constant 0 : i32
    return %arg0, %c1_i32, %c0_i32, %c0_i32_0 : i32, i32, i32, i32
  }
  func.func @transform_2(%arg0: i32, %arg1: i32) -> (i32, i32, i32, i32) {
    %c2_i32 = arith.constant 2 : i32
    %c0_i32 = arith.constant 0 : i32
    %c0_i32_0 = arith.constant 0 : i32
    %c0_i32_1 = arith.constant 0 : i32
    return %arg0, %c2_i32, %c0_i32, %c0_i32_0 : i32, i32, i32, i32
  }
  func.func @transform_3(%arg0: i32, %arg1: i32) -> (i32, i32, i32) {
    %c0_i32 = arith.constant 0 : i32
    %c0_i32_0 = arith.constant 0 : i32
    return %arg0, %c0_i32, %arg1 : i32, i32, i32
  }
}

</mosaic_0001>

<bundles_post_ra>
// kernel: tpu_custom_call.1
= control target key start
LH: loop header
LB: loop body
LE: loop exit
PB: predicated region body
PF: predicated region fallthrough
CT: control target
= control target key end

     0   :  { %8 = vsyncpa [#allocation3], 0  ;;  %s1367_s0 = inlined_call_operand.hbm [shape: f32[4,3,8,16], index: 0, kind: input, shape index: {}]   ;;  %s1368_s1 = inlined_call_operand.hbm [shape: f32[4,3,8,16], index: 1, kind: input, shape index: {}]   ;;  %s1369_s2 = inlined_call_operand.hbm [shape: f32[4,3,8,16], index: 2, kind: input, shape index: {}]   ;;  %s1370_s3 = inlined_call_operand.hbm [shape: f32[4,8,16], index: 3, kind: output, shape index: {}]  }
   0x1   :  { %9 = vsyncpa [#allocation6], 0 }
   0x2   :  { %10 = vsyncpa [#allocation4], 0  ;;  %s28_s14 = scalar_lea.hbm %s1368_s1, 128  ;;  %s1257_s15 = smov [#allocation5]  }
   0x3   :  { %s29_s16 = sshll.u32 %s1257_s15, 4  ;;  %s1258_s17 = smov [#allocation2]   ;;  %s30_s16 = int_to_ptr.vmem [resolvable:$true] %s29_s16 }
   0x4   :  { %s16_s18 = sshll.u32 %s1258_s17, 4  ;;  %s1175_s19 = scalar_lea.vmem %s30_s16, 512  ;;  %s17_s18 = int_to_ptr.vmem [resolvable:$true] %s16_s18 }
   0x5   :  { %p1176_p0 = scmp.ne.s32.totalorder %s30_s16, %s1175_s19  ;;  %p1180_p1 = scmp.lt.s32.totalorder %s30_s16, %s30_s16 }
   0x6   :  { %p1181_p2 = scmp.lt.s32.totalorder %s1175_s19, %s1175_s19 }
   0x8   :  { %p1182_p3 = por %p1181_p2, %p1180_p1 }
   0xa   :  { %p1183_p4 = pnand %p1182_p3, %p1176_p0 }
   0xc   :  { %1186 = shalt.err (!%p1183_p4)
}
   0xd   :  { %s1259_s20 = smov 384   ;;  %s1260_s21 = smov 128  }
   0xe   :  { %s1261_s22 = smov 8   ;;  %s1196_s1 = scalar_lea.vmem %s17_s18, 512 }
   0xf   :  { %35 = dma.hbm_to_vmem [thread:$0]  %s28_s14, 512, %s30_s16, [#allocation6], %s1259_s20, %s1260_s21, %s1261_s22  }
  0x10   :  { %p1197_p5 = scmp.ne.s32.totalorder %s17_s18, %s1196_s1  ;;  %p1201_p6 = scmp.lt.s32.totalorder %s17_s18, %s17_s18 }
  0x11   :  { %p1202_p7 = scmp.lt.s32.totalorder %s1196_s1, %s1196_s1 }
  0x13   :  { %p1203_p8 = por %p1202_p7, %p1201_p6 }
  0x15   :  { %p1204_p9 = pnand %p1203_p8, %p1197_p5 }
  0x17   :  { %1207 = shalt.err (!%p1204_p9)
}
  0x18   :  { %22 = dma.hbm_to_vmem [thread:$0]  %s1367_s0, 512, %s17_s18, [#allocation3], %s1259_s20, %s1260_s21, %s1261_s22  }
  0x19   :  { %s41_s27 = scalar_lea.hbm %s1369_s2, 256  ;;  %s1262_s28 = smov [#allocation7]  }
  0x1a   :  { %s42_s29 = sshll.u32 %s1262_s28, 4  ;;  %s43_s29 = int_to_ptr.vmem [resolvable:$true] %s42_s29 }
  0x1b   :  { %s1218_s30 = scalar_lea.vmem %s43_s29, 512  ;;  %p1223_p11 = scmp.lt.s32.totalorder %s43_s29, %s43_s29 }
  0x1c   :  { %p1219_p10 = scmp.ne.s32.totalorder %s43_s29, %s1218_s30  ;;  %p1224_p12 = scmp.lt.s32.totalorder %s1218_s30, %s1218_s30 }
  0x1e   :  { %p1225_p13 = por %p1224_p12, %p1223_p11 }
  0x20   :  { %p1226_p0 = pnand %p1225_p13, %p1219_p10 }
  0x22   :  { %1229 = shalt.err (!%p1226_p0)
}
  0x23   :  { %48 = dma.hbm_to_vmem [thread:$0]  %s41_s27, 512, %s43_s29, [#allocation6], %s1259_s20, %s1260_s21, %s1261_s22  }
  0x24   :  { %1251 = dma.done.wait [#allocation3], 512  }
  0x25   :  { %1252 = vsyncadd [#allocation3], 4294966784 }
  0x26   :  { %1253 = dma.done.wait [#allocation6], 1024  }
  0x27   :  { %1254 = vsyncadd [#allocation6], 4294966272  ;;  %v58_v0 = vld [vmem:[#allocation2] sm:$0xff]  ;;  %v60_v1 = vld [vmem:[#allocation2 + $0x10] sm:$0xff]  ;;  %vm106_vm0 = vcmask 64512   ;;  %vm527_vm1 = vcmask 130048  }
  0x28   :  { %v70_v2 = vmul.f32 0.35355338, %v58_v0  ;;  %v72_v3 = vmul.f32 0.35355338, %v60_v1  ;;  %v59_v4 = vld [vmem:[#allocation2 + $0x8] sm:$0xff]  ;;  %v61_v5 = vld [vmem:[#allocation2 + $0x18] sm:$0xff] }
  0x29   :  { %v62_v6 = vld [vmem:[#allocation5] sm:$0xff]  ;;  %v71_v7 = vmul.f32 0.35355338, %v59_v4  ;;  %v73_v8 = vmul.f32 0.35355338, %v61_v5  ;;  %v64_v9 = vld [vmem:[#allocation5 + $0x10] sm:$0xff] }
  0x2a   :  { %74 = vxpose.xlu0.b32.start.end [1/1] (short) (narrow) %v70_v2, 16  ;;  %301 = vxpose.xlu1.b32.start.end [1/1] (short) (narrow) %v72_v3, 16  ;;  %v63_v10 = vld [vmem:[#allocation5 + $0x8] sm:$0xff]  ;;  %v65_v11 = vld [vmem:[#allocation5 + $0x18] sm:$0xff]  ;;  %v1263_v36 = vmov 0.0   ;;  %vm1264_vm2 = vmmov 0  }
  0x2b   :  { %1076 = vmatprep.subr.mxu0 %v62_v6  ;;  %1081 = vmatprep.subr.mxu1 %v63_v10  ;;  %v66_v5 = vld [vmem:[#allocation7] sm:$0xff]  ;;  %vm943_vm3 = vcmask 130112   ;;  %s1265_s0 = smov [#allocation8]  }
  0x2c   :  { %1077 = vmatpush3.msra.mxu0 %v62_v6  ;;  %1082 = vmatpush3.msra.mxu1 %v63_v10  ;;  %s1019_s2 = sshll.u32 %s1265_s0, 4  ;;  %s1020_s2 = int_to_ptr.vmem [resolvable:$true] %s1019_s2 }
  0x2d   :  { %1086 = vmatprep.subr.mxu0 %v64_v9  ;;  %1091 = vmatprep.subr.mxu1 %v65_v11  ;;  %s1231_s4 = scalar_lea.vmem %s1020_s2, 512  ;;  %p1236_p2 = scmp.lt.s32.totalorder %s1020_s2, %s1020_s2 }
  0x2e   :  { %p1232_p1 = scmp.ne.s32.totalorder %s1020_s2, %s1231_s4  ;;  %p1237_p3 = scmp.lt.s32.totalorder %s1231_s4, %s1231_s4 }
  0x2f   :  { %188 = vxpose.xlu0.b32.start.end [1/1] (short) (narrow) %v71_v7, 16  ;;  %414 = vxpose.xlu1.b32.start.end [1/1] (short) (narrow) %v73_v8, 16  ;;  %v67_v8 = vld [vmem:[#allocation7 + $0x8] sm:$0xff] }
  0x30   :  { %p1238_p4 = por %p1237_p3, %p1236_p2 }
  0x32   :  { %p1239_p5 = pnand %p1238_p4, %p1232_p1 }
  0xa6   :  { %v90_v12 = vpop.trf.xlu0  ;;  %v317_v13 = vpop.trf.xlu1 }
  0xa7   :  { %1078 = vmatprep.mubr.msk.f32.mxu0 %vm106_vm0, %v90_v12 }
  0xaa   :  { %v91_v14 = vpop.trf.xlu0  ;;  %v318_v15 = vpop.trf.xlu1 }
  0xab   :  { %1079 = vmatmul.mubr.msk.f32.vlgmr.msra.gmra.mxu0 %vm106_vm0, %v91_v14 }
  0xac   :  { %1087 = vmatpush3.msra.mxu0 %v64_v9  ;;  %1088 = vmatprep.mubr.msk.f32.mxu0 %vm106_vm0, %v317_v13  ;;  %v68_v13 = vld [vmem:[#allocation7 + $0x10] sm:$0xff] }
  0xad   :  { %1096 = vmatprep.subr.mxu0 %v1263_v36 }
  0xae   :  { %v204_v16 = vpop.trf.xlu0  ;;  %v430_v17 = vpop.trf.xlu1 }
  0xaf   :  { %1083 = vmatprep.mubr.msk.f32.mxu1 %vm106_vm0, %v204_v16  ;;  %1089 = vmatmul.mubr.msk.f32.vlgmr.msra.gmra.mxu0 %vm106_vm0, %v318_v15  ;;  %v69_v16 = vld [vmem:[#allocation7 + $0x18] sm:$0xff] }
  0xb0   :  { %1100 = vmatprep.mubr.msk.f32.mxu0 %vm1264_vm2, %v1263_v36 }
  0xb2   :  { %v205_v18 = vpop.trf.xlu0  ;;  %v431_v19 = vpop.trf.xlu1 }
  0xb3   :  { %1084 = vmatmul.mubr.msk.f32.vlgmr.msra.gmra.mxu1 %vm106_vm0, %v205_v18 }
  0xb4   :  { %1092 = vmatpush3.msra.mxu1 %v65_v11  ;;  %1093 = vmatprep.mubr.msk.f32.mxu1 %vm106_vm0, %v430_v17 }
  0xb5   :  { %1103 = vmatprep.subr.mxu1 %v1263_v36 }
  0xb7   :  { %1094 = vmatmul.mubr.msk.f32.vlgmr.msra.gmra.mxu1 %vm106_vm0, %v431_v19 }
  0xb8   :  { %1107 = vmatprep.mubr.msk.f32.mxu1 %vm1264_vm2, %v1263_v36 }
 0x16b   :  { %v1080_v20 = vpop.f32.mrf.mxu0 }
 0x16c   :  { %v531_v21 = vsel %vm527_vm1, %v1080_v20, -inf }
 0x16d   :  { %532 = vmax.xlane.f32.xlu0 %v531_v21  ;;  %v179_v22 = vpop.f32.mrf.mxu0  ;;  %v932_v21 = vlaneseq }
 0x16e   :  { %v528_v29 = vsel %vm527_vm1, %v179_v22, -inf }
 0x16f   :  { %v1090_v23 = vpop.f32.mrf.mxu0 }
 0x170   :  { %v543_v24 = vsel %vm527_vm1, %v1090_v23, -inf }
 0x171   :  { %544 = vmax.xlane.f32.xlu0 %v543_v24  ;;  %v405_v25 = vpop.f32.mrf.mxu0 }
 0x172   :  { %v540_v26 = vsel %vm527_vm1, %v405_v25, -inf }
 0x173   :  { %v1085_v27 = vpop.f32.mrf.mxu1 }
 0x174   :  { %v537_v28 = vsel %vm527_vm1, %v1085_v27, -inf }
 0x175   :  { %541 = vmax.xlane.f32.xlu0 %v540_v26  ;;  %538 = vmax.xlane.f32.xlu1 %v537_v28  ;;  %v292_v30 = vpop.f32.mrf.mxu1  ;;  %v935_v26 = vshrl.u32 %v932_v21, 7 }
 0x176   :  { %v534_v31 = vsel %vm527_vm1, %v292_v30, -inf }
 0x177   :  { %v1095_v32 = vpop.f32.mrf.mxu1 }
 0x178   :  { %v549_v33 = vsel %vm527_vm1, %v1095_v32, -inf }
 0x179   :  { %529 = vmax.xlane.f32.xlu1 %v528_v29  ;;  %v518_v34 = vpop.f32.mrf.mxu1 }
 0x17a   :  { %v546_v35 = vsel %vm527_vm1, %v518_v34, -inf }
 0x17d   :  { %535 = vmax.xlane.f32.xlu1 %v534_v31 }
 0x181   :  { %550 = vmax.xlane.f32.xlu1 %v549_v33 }
 0x185   :  { %547 = vmax.xlane.f32.xlu1 %v546_v35 }
 0x1f6   :  { %v533_v37 = vpop.xlane.xlu0 %532 }
 0x1f7   :  { %v553_v38 = vsub.f32 %v1080_v20, %v533_v37 }
 0x1f9   :  { %v562_v39 = vmul.f32 1.442695, %v553_v38 }
 0x1fa   :  { %v545_v40 = vpop.xlane.xlu0 %544 }
 0x1fb   :  { %1133 = vpow2.f32 %v562_v39  ;;  %v557_v41 = vsub.f32 %v1090_v23, %v545_v40  ;;  %v933_v23 = vand.u32 127, %v932_v21 }
 0x1fd   :  { %v570_v44 = vmul.f32 1.442695, %v557_v41  ;;  %v936_v29 = vsub.s32 %v933_v23, %v935_v26 }
 0x1fe   :  { %v539_v42 = vpop.xlane.xlu1 %538  ;;  %v542_v46 = vpop.xlane.xlu0 %541 }
 0x1ff   :  { %v555_v43 = vsub.f32 %v1085_v27, %v539_v42  ;;  %v556_v49 = vsub.f32 %v405_v25, %v542_v46  ;;  %v938_v27 = vadd.s32 4294967288, %v933_v23 }
 0x201   :  { %v566_v45 = vmul.f32 1.442695, %v555_v43  ;;  %v568_v54 = vmul.f32 1.442695, %v556_v49  ;;  %v941_v31 = vsub.s32 %v938_v27, %v935_v26 }
 0x202   :  { %v530_v47 = vpop.xlane.xlu1 %529 }
 0x203   :  { %1135 = vpow2.f32 %v566_v45  ;;  %v552_v48 = vsub.f32 %v179_v22, %v530_v47 }
 0x204   :  { %1137 = vpow2.f32 %v570_v44 }
 0x205   :  { %v560_v50 = vmul.f32 1.442695, %v552_v48 }
 0x206   :  { %v536_v51 = vpop.xlane.xlu1 %535 }
 0x207   :  { %1139 = vpow2.f32 %v560_v50  ;;  %v554_v52 = vsub.f32 %v292_v30, %v536_v51 }
 0x208   :  { %v1134_v53 = vpop.eup %1133 }
 0x209   :  { %v564_v55 = vmul.f32 1.442695, %v554_v52  ;;  %1097 = vmatpush3.xpose.msk.msra.mxu0 %vm527_vm1, %v1134_v53  ;;  %v579_v56 = vsel %vm527_vm1, %v1134_v53, 0.0 }
 0x20a   :  { %v551_v57 = vpop.xlane.xlu1 %550  ;;  %580 = vadd.xlane.f32.xlu1 %v579_v56  ;;  %1098 = vmatprep.subr.mxu0 %v1263_v36 }
 0x20b   :  { %1141 = vpow2.f32 %v564_v55  ;;  %v559_v58 = vsub.f32 %v1095_v32, %v551_v57 }
 0x20c   :  { %1143 = vpow2.f32 %v568_v54 }
 0x20d   :  { %v574_v59 = vmul.f32 1.442695, %v559_v58 }
 0x20e   :  { %v548_v60 = vpop.xlane.xlu1 %547 }
 0x20f   :  { %1145 = vpow2.f32 %v574_v59  ;;  %v558_v61 = vsub.f32 %v518_v34, %v548_v60 }
 0x210   :  { %v1136_v62 = vpop.eup %1135 }
 0x211   :  { %v572_v63 = vmul.f32 1.442695, %v558_v61  ;;  %1104 = vmatpush3.xpose.msk.msra.mxu1 %vm527_vm1, %v1136_v62  ;;  %v585_v0 = vsel %vm527_vm1, %v1136_v62, 0.0  ;;  %v1138_v1 = vpop.eup %1137 }
 0x212   :  { %586 = vadd.xlane.f32.xlu1 %v585_v0  ;;  %1105 = vmatprep.subr.mxu1 %v1263_v36  ;;  %v591_v4 = vsel %vm527_vm1, %v1138_v1, 0.0 }
 0x213   :  { %1147 = vpow2.f32 %v572_v63 }
 0x214   :  { %v1140_v2 = vpop.eup %1139 }
 0x215   :  { %1099 = vmatpush3.xpose.msk.msra.mxu0 %vm527_vm1, %v1140_v2  ;;  %v576_v3 = vsel %vm527_vm1, %v1140_v2, 0.0 }
 0x216   :  { %577 = vadd.xlane.f32.xlu0 %v576_v3  ;;  %592 = vadd.xlane.f32.xlu1 %v591_v4 }
 0x217   :  { %1110 = vmatprep.subr.mxu0 %v1263_v36 }
 0x218   :  { %v1142_v6 = vpop.eup %1141  ;;  %1101 = vmatmul.mubr.msk.f32.vlgmr.msra.gmra.mxu0 %vm527_vm1, %v66_v5 }
 0x219   :  { %1106 = vmatpush3.xpose.msk.msra.mxu1 %vm527_vm1, %v1142_v6  ;;  %1111 = vmatpush3.xpose.msk.msra.mxu0 %vm527_vm1, %v1138_v1  ;;  %v582_v7 = vsel %vm527_vm1, %v1142_v6, 0.0  ;;  %v1144_v9 = vpop.eup %1143 }
 0x21a   :  { %583 = vadd.xlane.f32.xlu0 %v582_v7  ;;  %1112 = vmatprep.subr.mxu0 %v1263_v36  ;;  %v588_v12 = vsel %vm527_vm1, %v1144_v9, 0.0 }
 0x21b   :  { %1117 = vmatprep.subr.mxu1 %v1263_v36  ;;  %1114 = vmatprep.mubr.msk.f32.mxu0 %vm1264_vm2, %v1263_v36 }
 0x21c   :  { %v1146_v10 = vpop.eup %1145  ;;  %1108 = vmatmul.mubr.msk.f32.vlgmr.msra.gmra.mxu1 %vm527_vm1, %v67_v8 }
 0x21d   :  { %1113 = vmatpush3.xpose.msk.msra.mxu0 %vm527_vm1, %v1144_v9  ;;  %1118 = vmatpush3.xpose.msk.msra.mxu1 %vm527_vm1, %v1146_v10  ;;  %v597_v11 = vsel %vm527_vm1, %v1146_v10, 0.0 }
 0x21e   :  { %598 = vadd.xlane.f32.xlu1 %v597_v11  ;;  %589 = vadd.xlane.f32.xlu0 %v588_v12 }
 0x21f   :  { %1119 = vmatprep.subr.mxu1 %v1263_v36  ;;  %1121 = vmatprep.mubr.msk.f32.mxu1 %vm1264_vm2, %v1263_v36 }
 0x220   :  { %v1148_v14 = vpop.eup %1147  ;;  %1115 = vmatmul.mubr.msk.f32.vlgmr.msra.gmra.mxu0 %vm527_vm1, %v68_v13 }
 0x221   :  { %1120 = vmatpush3.xpose.msk.msra.mxu1 %vm527_vm1, %v1148_v14  ;;  %v594_v15 = vsel %vm527_vm1, %v1148_v14, 0.0 }
 0x222   :  { %595 = vadd.xlane.f32.xlu0 %v594_v15 }
 0x224   :  { %1122 = vmatmul.mubr.msk.f32.vlgmr.msra.gmra.mxu1 %vm527_vm1, %v69_v16 }
 0x293   :  { %v581_v18 = vpop.xlane.xlu1 %580 }
 0x29b   :  { %v587_v20 = vpop.xlane.xlu1 %586 }
 0x29f   :  { %v578_v17 = vpop.xlane.xlu0 %577  ;;  %v593_v24 = vpop.xlane.xlu1 %592 }
 0x2a0   :  { %1149 = vrcp.f32 %v578_v17 }
 0x2a1   :  { %1151 = vrcp.f32 %v581_v18 }
 0x2a3   :  { %v584_v19 = vpop.xlane.xlu0 %583 }
 0x2a4   :  { %1153 = vrcp.f32 %v584_v19 }
 0x2a5   :  { %1155 = vrcp.f32 %v587_v20 }
 0x2a7   :  { %v590_v22 = vpop.xlane.xlu0 %589  ;;  %v599_v28 = vpop.xlane.xlu1 %598 }
 0x2a8   :  { %1157 = vrcp.f32 %v590_v22 }
 0x2a9   :  { %1159 = vrcp.f32 %v593_v24 }
 0x2ab   :  { %v596_v25 = vpop.xlane.xlu0 %595 }
 0x2ac   :  { %1161 = vrcp.f32 %v596_v25 }
 0x2ad   :  { %v1150_v30 = vpop.eup %1149  ;;  %1163 = vrcp.f32 %v599_v28 }
 0x2ae   :  { %v1152_v32 = vpop.eup %1151  ;;  %v937_v33 = vrot.slane %v1150_v30, %v936_v29 }
 0x2af   :  { %v942_v35 = vrot.slane %v1152_v32, %v941_v31 }
 0x2b1   :  { %v1154_v34 = vpop.eup %1153  ;;  %v944_v38 = vsel %vm943_vm3, %v942_v35, %v937_v33 }
 0x2b2   :  { %v1156_v36 = vpop.eup %1155  ;;  %v948_v39 = vrot.slane %v1154_v34, %v936_v29 }
 0x2b3   :  { %v952_v42 = vrot.slane %v1156_v36, %v941_v31 }
 0x2b5   :  { %v1158_v40 = vpop.eup %1157  ;;  %v953_v46 = vsel %vm943_vm3, %v952_v42, %v948_v39 }
 0x2b6   :  { %v1160_v44 = vpop.eup %1159  ;;  %v957_v47 = vrot.slane %v1158_v40, %v936_v29 }
 0x2b7   :  { %v961_v51 = vrot.slane %v1160_v44, %v941_v31 }
 0x2b9   :  { %v1162_v48 = vpop.eup %1161  ;;  %v962_v54 = vsel %vm943_vm3, %v961_v51, %v957_v47 }
 0x2ba   :  { %v1164_v52 = vpop.eup %1163  ;;  %v966_v55 = vrot.slane %v1162_v48, %v936_v29 }
 0x2bb   :  { %v970_v58 = vrot.slane %v1164_v52, %v941_v31 }
 0x2bd   :  { %v971_v60 = vsel %vm943_vm3, %v970_v58, %v966_v55 }
 0x2d8   :  { %v675_v37 = vpop.f32.mrf.mxu0 }
 0x2d9   :  { %v1006_v41 = vmul.f32 %v944_v38, %v675_v37 }
 0x2da   :  { %v1102_v43 = vpop.f32.mrf.mxu0 }
 0x2db   :  { %1010 = vst.msk [vmem:[#allocation8] sm:$0xff] %vm527_vm1, %v1006_v41 }
 0x2dc   :  { %v754_v45 = vpop.f32.mrf.mxu1 }
 0x2dd   :  { %v1007_v49 = vmul.f32 %v953_v46, %v754_v45 }
 0x2de   :  { %v1109_v50 = vpop.f32.mrf.mxu1 }
 0x2df   :  { %1011 = vst.msk [vmem:[#allocation8 + $0x8] sm:$0xff] %vm527_vm1, %v1007_v49 }
 0x2e0   :  { %v833_v53 = vpop.f32.mrf.mxu0 }
 0x2e1   :  { %v1008_v56 = vmul.f32 %v962_v54, %v833_v53 }
 0x2e2   :  { %v1116_v57 = vpop.f32.mrf.mxu0 }
 0x2e3   :  { %1012 = vst.msk [vmem:[#allocation8 + $0x10] sm:$0xff] %vm527_vm1, %v1008_v56 }
 0x2e4   :  { %v912_v59 = vpop.f32.mrf.mxu1 }
 0x2e5   :  { %v1009_v61 = vmul.f32 %v971_v60, %v912_v59 }
 0x2e6   :  { %v1123_v62 = vpop.f32.mrf.mxu1 }
 0x2e7   :  { %1013 = vst.msk [vmem:[#allocation8 + $0x18] sm:$0xff] %vm527_vm1, %v1009_v61 }
 0x2e8   :  { %1242 = shalt.err (!%p1239_p5)
}
 0x2e9   :  { %1025 = dma.vmem_to_hbm [thread:$0]  %s1020_s2, 512, %s1370_s3, [#allocation4], %s1260_s21, %s1260_s21, %s1261_s22  }
 0x2ea   :  { %1255 = dma.done.wait [#allocation4], 512  }
 0x2eb   :  { %1256 = vsyncadd [#allocation4], 4294966784 }
 0x2ec   :  { %1029 = vsyncpa [#allocation3], 1 }
 0x2ed   :  { %1030 = vsyncpa [#allocation6], 1 }
 0x2ee   :  { %1031 = vsyncpa [#allocation4], 1 }

</bundles_post_ra>
